<compile_context>
chip_gen: v6e
topology: v6e:2x2x1
jax: 0.10.0
libtpu: 0.0.40
codegen_flags: <defaults>
</compile_context>

<pallas_src>
import jax
import jax.numpy as jnp
from jax.experimental import pallas as pl
from jax.experimental.pallas import tpu as pltpu


def clip_classifier_kernel(x_ref, w_enc_ref, b_enc_ref, w_fc_ref, b_fc_ref,
                           out_ref, acc_ref):
    """Grid = (batch_tiles, k_tiles). acc_ref: [tm, D] f32 accumulator."""
    k = pl.program_id(1)

    @pl.when(k == 0)
    def _():
        acc_ref[...] = jnp.zeros_like(acc_ref)

    # Frozen "encode_image" stand-in: bf16 tower matmul, f32 accumulation.
    # x arrives bf16 from the producer; astype is a no-op fallback for f32 feeds.
    x_bf16 = x_ref[...].astype(jnp.bfloat16)
    acc_ref[...] += jnp.dot(x_bf16, w_enc_ref[...],
                            preferred_element_type=jnp.float32)

    @pl.when(k == pl.num_programs(1) - 1)
    def _():
        # features = features.float()  (accumulator already f32) + encoder bias
        feats = acc_ref[...] + b_enc_ref[...].astype(jnp.float32)        # [tm, D]
        # fc: Linear(D, 1) as a lane-dense VPU multiply + lane reduce
        # (avoids an N=1 MXU pass and a [D, 1] padded-lane operand).
        logits = jnp.sum(feats * w_fc_ref[...], axis=-1, keepdims=True)  # [tm, 1]
        logits = logits + b_fc_ref[0]
        out_ref[...] = jax.nn.sigmoid(logits)


def _round_up(x, m):
    return ((x + m - 1) // m) * m


def _tpu_vmem_budget_and_cores():
    """Generation-aware scoped-VMEM budget (bytes) and TensorCore count."""
    vmem_cap = 64 << 20          # conservative fallback (v7x per-TC VMEM)
    num_cores = 1
    try:
        info = pltpu.get_tpu_info()
        vmem_cap = int(getattr(info, "vmem_capacity_bytes", vmem_cap))
        for attr in ("num_tensorcores", "tensorcores_per_chip",
                     "num_cores", "cores_per_chip"):
            v = getattr(info, attr, None)
            if v:
                num_cores = max(1, int(v))
                break
    except Exception:
        pass
    # Leave headroom for Mosaic internal scratch: ~80% of physical, never all.
    budget = min((vmem_cap * 4) // 5, vmem_cap - (8 << 20))
    return budget, num_cores


def clip_classifier(images, w_enc, b_enc, w_fc_row, b_fc, *, tm=None, tk=None):
    """images: [B, C, H, W] (bf16 preferred, f32 accepted). Returns probs [B, 1] f32.

    w_enc:    [K, D]  frozen encoder projection (bf16), K = C*H*W
    b_enc:    [1, D]  frozen encoder bias (bf16)
    w_fc_row: [1, D]  fc weight as a lane-dense row (f32)
    b_fc:     [1]     fc bias (f32), lives in SMEM
    """
    B = images.shape[0]
    K, D = w_enc.shape
    x_flat = images.reshape(B, K)          # view; dtype passes through untouched
    x_bytes = jnp.dtype(x_flat.dtype).itemsize
    w_bytes = jnp.dtype(w_enc.dtype).itemsize

    budget, num_cores = _tpu_vmem_budget_and_cores()

    def fits(tm_, tk_):
        vmem = (2 * (tm_ * tk_ * x_bytes          # x tile, double-buffered
                     + tk_ * D * w_bytes          # w_enc tile, double-buffered
                     + D * w_bytes + D * 4        # b_enc / w_fc rows
                     + tm_ * 4)                   # out tile
                + tm_ * D * 4)                    # f32 accumulator (scratch)
        return vmem <= budget

    tk_min = 128 if K % 128 == 0 else K

    if tm is None:
        # Fewest batch tiles that fit VMEM (w_enc is re-streamed per batch
        # tile), but keep >= num_cores tiles so the "parallel" axis feeds
        # every TensorCore (v7x has 2 per chip).
        tm = _round_up(B, 8)
        if num_cores > 1 and B > 8:
            tm = min(tm, _round_up(pl.cdiv(B, num_cores), 8))
        while tm > 8 and not fits(tm, tk_min):
            tm = _round_up(tm // 2, 8)
    assert tm % 8 == 0, "batch tile must be a sublane multiple"

    if tk is None:
        if K % 128 == 0:
            tk = 128
            m = K // 128
            for d in range(1, m + 1):   # largest lane-aligned divisor of K that fits
                cand = 128 * d
                if m % d == 0 and fits(tm, cand):
                    tk = cand
        else:
            tk = K                       # ragged K: single full-K block
    assert K % tk == 0 and (tk % 128 == 0 or tk == K), (
        f"tk={tk} must divide K={K} and be lane-aligned (or equal K)")
    assert fits(tm, tk), (
        f"tiles tm={tm}, tk={tk} exceed the VMEM budget ({budget} bytes)")

    grid = (pl.cdiv(B, tm), K // tk)     # partial final batch block is masked

    out = pl.pallas_call(
        clip_classifier_kernel,
        out_shape=jax.ShapeDtypeStruct((B, 1), jnp.float32),
        grid_spec=pltpu.PrefetchScalarGridSpec(
            num_scalar_prefetch=0,
            grid=grid,
            in_specs=[
                pl.BlockSpec((tm, tk), lambda i, k: (i, k)),        # x
                pl.BlockSpec((tk, D), lambda i, k: (k, 0)),         # w_enc (bf16)
                pl.BlockSpec((1, D), lambda i, k: (0, 0)),          # b_enc
                pl.BlockSpec((1, D), lambda i, k: (0, 0)),          # w_fc row
                pl.BlockSpec(memory_space=pltpu.MemorySpace.SMEM),  # b_fc scalar
            ],
            out_specs=pl.BlockSpec((tm, 1), lambda i, k: (i, 0)),
            scratch_shapes=[pltpu.VMEM((tm, D), jnp.float32)],
        ),
        compiler_params=pltpu.CompilerParams(
            dimension_semantics=("parallel", "arbitrary"),
            vmem_limit_bytes=int(budget),
        ),
        cost_estimate=pl.CostEstimate(
            flops=2 * B * K * D,
            transcendentals=B,
            bytes_accessed=(B * K * x_bytes               # x streamed once
                            + grid[0] * K * D * w_bytes   # w_enc per batch tile
                            + B * 4),                     # output
        ),
    )(x_flat, w_enc, b_enc, w_fc_row, b_fc)

    return out


if __name__ == "__main__":
    # Small shapes consistent with the forward: images [B=2, C=4, H=16, W=16],
    # synthetic CLIP visual output_dim D=32, fc: Linear(32, 1).
    B, C, H, W = 2, 4, 16, 16
    K = C * H * W          # 1024
    D = 32                 # clip_model.visual.output_dim

    key = jax.random.PRNGKey(0)
    k_img, k_wenc, k_benc, k_wfc, k_bfc = jax.random.split(key, 5)

    # Images arrive from the producer already in bf16 (half-precision CLIP
    # tower input) -- no separate wrapper-side cast pass.
    images = jax.random.normal(k_img, (B, C, H, W),
                               dtype=jnp.float32).astype(jnp.bfloat16)

    # Frozen synthetic encoder params (bf16, deterministic).
    w_enc = (jax.random.normal(k_wenc, (K, D), dtype=jnp.float32)
             * (1.0 / jnp.sqrt(K))).astype(jnp.bfloat16)
    b_enc = (jax.random.normal(k_benc, (1, D), dtype=jnp.float32)
             * 0.02).astype(jnp.bfloat16)

    # fc = nn.Linear(D, 1): weight kept as a lane-dense [1, D] row; bias [1].
    w_fc_row = (jax.random.normal(k_wfc, (1, D), dtype=jnp.float32)
                * (1.0 / jnp.sqrt(D))).astype(jnp.float32)
    b_fc = (jax.random.normal(k_bfc, (1,), dtype=jnp.float32) * 0.02).astype(jnp.float32)

    # tk=512 -> two K-steps so the accumulator/reduction path is exercised.
    out = clip_classifier(images, w_enc, b_enc, w_fc_row, b_fc, tk=512)
    out = jax.block_until_ready(out)

    # Pure-JAX reference of the same synthetic forward.
    x_bf16 = images.reshape(B, K)
    feats_ref = (x_bf16 @ w_enc).astype(jnp.float32) + b_enc.astype(jnp.float32)
    ref = jax.nn.sigmoid(jnp.sum(feats_ref * w_fc_row, axis=-1, keepdims=True) + b_fc)

    assert out.shape == (B, 1) and out.dtype == jnp.float32
    assert jnp.allclose(out, ref, atol=1e-2), (out, ref)

    print("KERNEL_OK")
</pallas_src>

<mosaic_0001>
module attributes {stable_mosaic.version = 11 : i64} {
  func.func @clip_classifier_kernel(%arg0: i32, %arg1: i32, %arg2: memref<8x512xbf16, #tpu.memory_space<vmem>>, %arg3: memref<512x32xbf16, #tpu.memory_space<vmem>>, %arg4: memref<1x32xbf16, #tpu.memory_space<vmem>>, %arg5: memref<1x32xf32, #tpu.memory_space<vmem>>, %arg6: memref<1xf32, #tpu.memory_space<smem>>, %arg7: memref<8x1xf32, #tpu.memory_space<vmem>>, %arg8: memref<8x32xf32, #tpu.memory_space<vmem>>) attributes {dimension_semantics = [#tpu.dimension_semantics<parallel>, #tpu.dimension_semantics<arbitrary>], iteration_bounds = array<i64: 1, 2>, scalar_prefetch = 0 : i64, scratch_operands = 1 : i64, tpu.core_type = #tpu.core_type<tc>, window_params = [{transform_indices = @transform_0, window_bounds = array<i64: 8, 512>}, {transform_indices = @transform_1, window_bounds = array<i64: 512, 32>}, {pipeline_mode = #tpu.pipeline_mode<synchronous>, transform_indices = @transform_2, window_bounds = array<i64: 1, 32>}, {pipeline_mode = #tpu.pipeline_mode<synchronous>, transform_indices = @transform_3, window_bounds = array<i64: 1, 32>}, {transform_indices = @transform_4, window_bounds = array<i64: 1>}, {transform_indices = @transform_5, window_bounds = array<i64: 8, 1>}]} {
    %c0_i32 = arith.constant 0 : i32
    %0 = arith.cmpi eq, %arg1, %c0_i32 : i32
    %1 = arith.extui %0 : i1 to i32
    %c0_i32_0 = arith.constant 0 : i32
    %2 = arith.cmpi ne, %1, %c0_i32_0 : i32
    scf.if %2 {
      %cst_9 = arith.constant 0.000000e+00 : f32
      %12 = vector.broadcast %cst_9 : f32 to vector<8x32xf32>
      %c0_10 = arith.constant 0 : index
      %c0_11 = arith.constant 0 : index
      %13 = vector.load %arg8[%c0_10, %c0_11] : memref<8x32xf32, #tpu.memory_space<vmem>>, vector<8x32xf32>
      tpu.vector_store %arg8[%c0_10, %c0_11], %12 {strides = array<i32>} : memref<8x32xf32, #tpu.memory_space<vmem>>, vector<8x32xf32>,
    } else {
    }
    %c0 = arith.constant 0 : index
    %c0_1 = arith.constant 0 : index
    %3 = vector.load %arg2[%c0, %c0_1] : memref<8x512xbf16, #tpu.memory_space<vmem>>, vector<8x512xbf16>
    %c0_2 = arith.constant 0 : index
    %c0_3 = arith.constant 0 : index
    %4 = vector.load %arg8[%c0_2, %c0_3] : memref<8x32xf32, #tpu.memory_space<vmem>>, vector<8x32xf32>
    %c0_4 = arith.constant 0 : index
    %c0_5 = arith.constant 0 : index
    %5 = vector.load %arg3[%c0_4, %c0_5] : memref<512x32xbf16, #tpu.memory_space<vmem>>, vector<512x32xbf16>
    %cst = arith.constant dense<0.000000e+00> : vector<8x32xf32>
    %6 = tpu.matmul %3, %5, %cst {dimension_numbers = #tpu.dot_dimension_numbers<[1], [0], [0], [1], [0, 0, 1, 1], [], []>} : vector<8x512xbf16>, vector<512x32xbf16>, vector<8x32xf32> -> vector<8x32xf32>
    %7 = arith.addf %4, %6 : vector<8x32xf32>
    %c0_6 = arith.constant 0 : index
    %c0_7 = arith.constant 0 : index
    %8 = vector.load %arg8[%c0_6, %c0_7] : memref<8x32xf32, #tpu.memory_space<vmem>>, vector<8x32xf32>
    tpu.vector_store %arg8[%c0_6, %c0_7], %7 {strides = array<i32>} : memref<8x32xf32, #tpu.memory_space<vmem>>, vector<8x32xf32>,
    %c1_i32 = arith.constant 1 : i32
    %9 = arith.cmpi eq, %arg1, %c1_i32 : i32
    %10 = arith.extui %9 : i1 to i32
    %c0_i32_8 = arith.constant 0 : i32
    %11 = arith.cmpi ne, %10, %c0_i32_8 : i32
    scf.if %11 {
      %c0_9 = arith.constant 0 : index
      %c0_10 = arith.constant 0 : index
      %12 = vector.load %arg8[%c0_9, %c0_10] : memref<8x32xf32, #tpu.memory_space<vmem>>, vector<8x32xf32>
      %c0_11 = arith.constant 0 : index
      %c0_12 = arith.constant 0 : index
      %13 = vector.load %arg4[%c0_11, %c0_12] : memref<1x32xbf16, #tpu.memory_space<vmem>>, vector<1x32xbf16>
      %14 = arith.extf %13 : vector<1x32xbf16> to vector<1x32xf32>
      %15 = vector.broadcast %14 : vector<1x32xf32> to vector<8x32xf32>
      %16 = arith.addf %12, %15 : vector<8x32xf32>
      %c0_13 = arith.constant 0 : index
      %c0_14 = arith.constant 0 : index
      %17 = vector.load %arg5[%c0_13, %c0_14] : memref<1x32xf32, #tpu.memory_space<vmem>>, vector<1x32xf32>
      %18 = vector.broadcast %17 : vector<1x32xf32> to vector<8x32xf32>
      %19 = arith.mulf %16, %18 : vector<8x32xf32>
      %cst_15 = arith.constant dense<0.000000e+00> : vector<8xf32>
      %20 = vector.multi_reduction <add>, %19, %cst_15 [1] : vector<8x32xf32> to vector<8xf32>
      %21 = vector.shape_cast %20 : vector<8xf32> to vector<8x1xf32>
      %c0_16 = arith.constant 0 : index
      %22 = memref.load %arg6[%c0_16] : memref<1xf32, #tpu.memory_space<smem>>
      %23 = vector.broadcast %22 : f32 to vector<8x1xf32>
      %24 = arith.addf %21, %23 : vector<8x1xf32>
      %25 = arith.negf %24 : vector<8x1xf32>
      %26 = math.exp %25 : vector<8x1xf32>
      %cst_17 = arith.constant 1.000000e+00 : f32
      %27 = vector.broadcast %cst_17 : f32 to vector<8x1xf32>
      %28 = arith.addf %27, %26 : vector<8x1xf32>
      %29 = arith.divf %27, %28 : vector<8x1xf32>
      %c0_18 = arith.constant 0 : index
      %c0_19 = arith.constant 0 : index
      %30 = vector.load %arg7[%c0_18, %c0_19] : memref<8x1xf32, #tpu.memory_space<vmem>>, vector<8x1xf32>
      tpu.vector_store %arg7[%c0_18, %c0_19], %29 {strides = array<i32>} : memref<8x1xf32, #tpu.memory_space<vmem>>, vector<8x1xf32>,
    } else {
    }
    return
  }
  func.func @transform_0(%arg0: i32, %arg1: i32) -> (i32, i32) {
    %c0_i32 = arith.constant 0 : i32
    return %arg0, %arg1 : i32, i32
  }
  func.func @transform_1(%arg0: i32, %arg1: i32) -> (i32, i32) {
    %c0_i32 = arith.constant 0 : i32
    %c0_i32_0 = arith.constant 0 : i32
    return %arg1, %c0_i32 : i32, i32
  }
  func.func @transform_2(%arg0: i32, %arg1: i32) -> (i32, i32) {
    %c0_i32 = arith.constant 0 : i32
    %c0_i32_0 = arith.constant 0 : i32
    %c0_i32_1 = arith.constant 0 : i32
    return %c0_i32, %c0_i32_0 : i32, i32
  }
  func.func @transform_3(%arg0: i32, %arg1: i32) -> (i32, i32) {
    %c0_i32 = arith.constant 0 : i32
    %c0_i32_0 = arith.constant 0 : i32
    %c0_i32_1 = arith.constant 0 : i32
    return %c0_i32, %c0_i32_0 : i32, i32
  }
  func.func @transform_4(%arg0: i32, %arg1: i32) -> i32 {
    %c0_i32 = arith.constant 0 : i32
    %c0_i32_0 = arith.constant 0 : i32
    return %c0_i32 : i32
  }
  func.func @transform_5(%arg0: i32, %arg1: i32) -> (i32, i32) {
    %c0_i32 = arith.constant 0 : i32
    %c0_i32_0 = arith.constant 0 : i32
    return %arg0, %c0_i32 : i32, i32
  }
}

</mosaic_0001>

<bundles_post_ra>
// kernel: tpu_custom_call.1
= control target key start
LH: loop header
LB: loop body
LE: loop exit
PB: predicated region body
PF: predicated region fallthrough
CT: control target
= control target key end

     0   :  { %s1384_s0 = inlined_call_operand.vmem [shape: bf16[2,1024], index: 0, kind: input, shape index: {}]   ;;  %s1385_s1 = inlined_call_operand.vmem [shape: bf16[1024,32], index: 1, kind: input, shape index: {}]   ;;  %s1386_s2 = inlined_call_operand.vmem [shape: bf16[1,32], index: 2, kind: input, shape index: {}]   ;;  %s1387_s3 = inlined_call_operand.vmem [shape: f32[1,32], index: 3, kind: input, shape index: {}]   ;;  %s1388_s4 = inlined_call_operand.<no memory space> [shape: f32[1], index: 4, kind: input, shape index: {}]   ;;  %s1389_s5 = inlined_call_operand.vmem [shape: f32[2,1], index: 5, kind: output, shape index: {}]  }
   0x1   :  { %10 = sst [smem:[#allocation3]] %s1388_s4 }
   0x2   :  { %s1264_s20 = smov 0   ;;  %s1266_s21 = smov 0  }
   0x3   :  { %s1268_s22 = smov 0   ;;  %s1270_s23 = smov 0  }
   0x4   :  { %s1272_s24 = smov 0  }
   0x5 LB: > { %s907_s4 = sadd.s32 4294967295, %s1219_s24   ;;  %s25_s25 = sadd.s32 1, %s1215_s23  ;;  %s1219_s24 = sphi %s1272_s24, %s16_s24   ;;  %s1215_s23 = sphi %s1270_s23, %s1393_s23   ;;  %s1211_s22 = sphi %s1268_s22, %s1392_s22   ;;  %s1207_s21 = sphi %s1266_s21, %s1391_s21   ;;  %s1203_s20 = sphi %s1264_s20, %s1390_s20  }
   0x6   : > { %p26_p0 = scmp.ge.s32.totalorder %s25_s25, 2  ;;  %p44_p1 = scmp.ne.s32.totalorder %s1207_s21, %s1203_s20 }
   0x7   : > { %p45_p2 = scmp.eq.s32.totalorder %s1219_s24, 0  ;;  %s37_s27 = sadd.s32 1, %s1207_s21 }
   0x8   : > { %s1395_s25 = smov (%p26_p0, %s25_s25), 0  ;;  %p909_p5 = scmp.ge.s32.totalorder %s1219_s24, 2 }
   0x9   : > { %p46_p3 = por %p45_p2, %p44_p1  ;;  %s33_s26 = ssub.s32 %s1215_s23, %s1395_s25 }
   0xa   : > { %p35_p4 = scmp.eq.s32.totalorder %s33_s26, 0  ;;  %194 = sbr.rel (%p909_p5) target bundleno = 28 (0x1c), region = 28 }
   0xc   : > { %s1300_s28 = scalar_select %p35_p4, %s1207_s21, %s37_s27  }
   0xf   : > { %197 = sbr.rel (!%p46_p3) target bundleno = 28 (0x1c), region = 32  ;;  %s199_s29 = sand.u32 (%p46_p3), 1, %s1207_s21  }
  0x10   : > { %s911_s30 = sshll.u32 (%p46_p3), %s1215_s23, 2  ;;  %s910_s6 = sshll.u32 (%p46_p3), %s199_s29, 4 }
  0x11   : > { %s210_s9 = scalar_lea.vmem (%p46_p3), %s1384_s0, %s911_s30   ;;  %s201_s10 = scalar_lea.vmem (%p46_p3), [#allocation4], %s910_s6  }
  0x12   : > { %s1221_s11 = smov (%p46_p3), 0  }
  0x14 LB: >> { %v229_v0 = vld [vmem:[%s210_s9] sm:$0xf]  ;;  %s223_s11 = sadd.s32 1, %s1223_s11   ;;  %s1223_s11 = sphi %s1221_s11, %s223_s11  }
  0x15   : >> { %230 = vst [vmem:[%s201_s10] sm:$0xf] %v229_v0  ;;  %p222_p6 = scmp.ge.s32.totalorder %s223_s11, 1 }
  0x17   : > { %225 = sbr.rel (!%p222_p6) target bundleno = 20 (0x14), region = 151 }
  0x1c PF: > { %p914_p7 = scmp.ge.s32.totalorder %s1219_s24, 1  ;;  %p271_p8 = scmp.lt.s32.totalorder %s1219_s24, 3 }
  0x1e   : > { %p272_p9 = pnand %p914_p7, %p271_p8 }
  0x1f   : > { %s278_s12 = sand.u32 (!%p272_p9), 1, %s1203_s20   ;;  %s916_s13 = sshll.u32 (!%p272_p9), %s1211_s22, 6 }
  0x20   : > { %275 = sbr.rel (%p272_p9) target bundleno = 481 (0x1e1), region = 70  ;;  %s1312_s14 = sshll.u32 (!%p272_p9), %s278_s12, 4 }
  0x21   : > { %p311_p10 = scmp.lt.s32.totalorder (!%p272_p9), %s916_s13, 127  ;;  %s280_s19 = scalar_lea.vmem (!%p272_p9), [#allocation4], %s1312_s14 }
  0x22   : > { %p918_p11 = scmp.ne.s32.totalorder (!%p272_p9), %s1211_s22, 0 }
  0x25   : > { %s1397_s13 = smov (!%p311_p10, %s916_s13), 127  ;;  %323 = sbr.rel (%p918_p11) target bundleno = 44 (0x2c), region = 78 }
  0x26   : > { %s917_s15 = sshll.u32 %s1397_s13, 2 }
  0x27   : > { %s1317_s18 = scalar_lea.vmem %s1385_s1, %s917_s15 }
  0x2a   : > { %vm324_vm0 = vcmask 261120   ;;  %v1229_v1 = vmov 0.0  }
  0x2b   : > { %325 = vst.msk [vmem:[#allocation2] sm:$0xff] %vm324_vm0, %v1229_v1 }
  0x2c PF: > { %v1109_v2 = vld [vmem:[%s1317_s18 + $0x78] sm:$0xff]   ;;  %v1113_v6 = vld [vmem:[%s1317_s18 + $0x70] sm:$0xff]   ;;  %v1117_v10 = vld [vmem:[%s1317_s18 + $0x68] sm:$0xff]   ;;  %v404_v33 = vlaneseq  ;;  %v1230_v35 = vmov 1966171168   ;;  %vm710_vm1 = vcmask 261120  }
  0x2d   : > { %v1110_v3 = vld [vmem:[%s1317_s18 + $0xf8] sm:$0xff]   ;;  %959 = vmatprep.subr.bf16.mxu0 %v1109_v2  ;;  %v1114_v7 = vld [vmem:[%s1317_s18 + $0xf0] sm:$0xff]   ;;  %v1118_v11 = vld [vmem:[%s1317_s18 + $0xe8] sm:$0xff]   ;;  %v402_v36 = vunpack.c.l.s4 %v1230_v35  ;;  %p951_p12 = scmp.ne.s32.totalorder %s1211_s22, 1 }
  0x2e   : > { %v1111_v4 = vld [vmem:[%s1317_s18 + $0x38] sm:$0xff]   ;;  %981 = vmatprep.subr.bf16.mxu1 %v1110_v3  ;;  %v1115_v8 = vld [vmem:[%s1317_s18 + $0x30] sm:$0xff]   ;;  %v1119_v12 = vld [vmem:[%s1317_s18 + $0x28] sm:$0xff]   ;;  %v405_v37 = vshrl.u32 %v404_v33, 7  ;;  %s735_s30 = sld [smem:[#allocation3]] (!%p951_p12) }
  0x2f   : > { %v1112_v5 = vld [vmem:[%s1317_s18 + $0xb8] sm:$0xff]   ;;  %960 = vmatpush3.bf16.msra.mxu0 %v1111_v4  ;;  %v1116_v9 = vld [vmem:[%s1317_s18 + $0xb0] sm:$0xff]   ;;  %v1120_v13 = vld [vmem:[%s1317_s18 + $0xa8] sm:$0xff]   ;;  %v403_v40 = vunpack.c.0.s8 %v402_v36 }
  0x30   : > { %982 = vmatpush3.bf16.msra.mxu1 %v1112_v5  ;;  %961 = vmatprep.subr.bf16.mxu0 %v1113_v6  ;;  %v1121_v14 = vld [vmem:[%s1317_s18 + $0x60] sm:$0xff]   ;;  %v1125_v18 = vld [vmem:[%s1317_s18 + $0x58] sm:$0xff]   ;;  %v1129_v22 = vld [vmem:[%s1317_s18 + $0x50] sm:$0xff]  }
  0x31   : > { %983 = vmatprep.subr.bf16.mxu1 %v1114_v7  ;;  %v1122_v15 = vld [vmem:[%s1317_s18 + $0xe0] sm:$0xff]   ;;  %v1126_v19 = vld [vmem:[%s1317_s18 + $0xd8] sm:$0xff]   ;;  %v1130_v23 = vld [vmem:[%s1317_s18 + $0xd0] sm:$0xff]   ;;  %v406_v41 = vsub.s32 %v403_v40, %v405_v37 }
  0x32   : > { %v1123_v16 = vld [vmem:[%s1317_s18 + $0x20] sm:$0xff]   ;;  %v1127_v20 = vld [vmem:[%s1317_s18 + $0x18] sm:$0xff]   ;;  %v1131_v24 = vld [vmem:[%s1317_s18 + $0x10] sm:$0xff]  }
  0x33   : > { %962 = vmatpush3.bf16.msra.mxu0 %v1115_v8  ;;  %v1124_v17 = vld [vmem:[%s1317_s18 + $0xa0] sm:$0xff]   ;;  %v1128_v21 = vld [vmem:[%s1317_s18 + $0x98] sm:$0xff]   ;;  %v1132_v25 = vld [vmem:[%s1317_s18 + $0x90] sm:$0xff]  }
  0x34   : > { %984 = vmatpush3.bf16.msra.mxu1 %v1116_v9  ;;  %963 = vmatprep.subr.bf16.mxu0 %v1117_v10  ;;  %v1133_v26 = vld [vmem:[%s1317_s18 + $0x48] sm:$0xff]   ;;  %v1137_v30 = vld [vmem:[%s1317_s18 + $0x40] sm:$0xff]  }
  0x35   : > { %985 = vmatprep.subr.bf16.mxu1 %v1118_v11  ;;  %v1134_v27 = vld [vmem:[%s1317_s18 + $0xc8] sm:$0xff]   ;;  %v1138_v31 = vld [vmem:[%s1317_s18 + $0xc0] sm:$0xff]  }
  0x36   : > { %v1135_v28 = vld [vmem:[%s1317_s18 + $0x8] sm:$0xff]   ;;  %v1139_v32 = vld [vmem:[%s1317_s18] sm:$0xff]  }
  0x37   : > { %964 = vmatpush3.bf16.msra.mxu0 %v1119_v12  ;;  %v1136_v29 = vld [vmem:[%s1317_s18 + $0x88] sm:$0xff]   ;;  %v1140_v34 = vld [vmem:[%s1317_s18 + $0x80] sm:$0xff]  }
  0x38   : > { %986 = vmatpush3.bf16.msra.mxu1 %v1120_v13  ;;  %965 = vmatprep.subr.bf16.mxu0 %v1121_v14  ;;  %v1147_v38 = vld.sshfl [vmem:[%s280_s19] sm:$0xff pattern:$0x75316420]  ;;  %v1148_v39 = vld.sshfl [vmem:[%s280_s19 + $0x8] sm:$0xff pattern:$0x75316420] }
  0x39   : > { %987 = vmatprep.subr.bf16.mxu1 %v1122_v15  ;;  %v416_v42 = vcombine.high %v1147_v38, %v1148_v39  ;;  %v415_v43 = vcombine.low %v1147_v38, %v1148_v39  ;;  %v330_v55 = vld [vmem:[#allocation2] sm:$0xff] }
  0x3b   : > { %966 = vmatpush3.bf16.msra.mxu0 %v1123_v16  ;;  %v430_v44 = vrot.slane %v416_v42, %v406_v41  ;;  %v423_v45 = vrot.slane %v415_v43, %v406_v41 }
  0x3c   : > { %988 = vmatpush3.bf16.msra.mxu1 %v1124_v17  ;;  %967 = vmatprep.subr.bf16.mxu0 %v1125_v18 }
  0x3d   : > { %989 = vmatprep.subr.bf16.mxu1 %v1126_v19  ;;  %661 = vmatprep.mubr.bf16.mxu0 %v430_v44  ;;  %v432_v46 = vcombine.high %v430_v44, %v430_v44  ;;  %v431_v47 = vcombine.high %v423_v45, %v423_v45 }
  0x3f   : > { %968 = vmatpush3.bf16.msra.mxu0 %v1127_v20  ;;  %701 = vmatprep.mubr.bf16.mxu1 %v432_v46 }
  0x40   : > { %990 = vmatpush3.bf16.msra.mxu1 %v1128_v21  ;;  %969 = vmatprep.subr.bf16.mxu0 %v1129_v22 }
  0x41   : > { %991 = vmatprep.subr.bf16.mxu1 %v1130_v23 }
  0x43   : > { %970 = vmatpush3.bf16.msra.mxu0 %v1131_v24 }
  0x44   : > { %992 = vmatpush3.bf16.msra.mxu1 %v1132_v25  ;;  %971 = vmatprep.subr.bf16.mxu0 %v1133_v26 }
  0x45   : > { %993 = vmatprep.subr.bf16.mxu1 %v1134_v27 }
  0x47   : > { %972 = vmatpush3.bf16.msra.mxu0 %v1135_v28 }
  0x48   : > { %994 = vmatpush3.bf16.msra.mxu1 %v1136_v29  ;;  %973 = vmatprep.subr.bf16.mxu0 %v1137_v30 }
  0x49   : > { %995 = vmatprep.subr.bf16.mxu1 %v1138_v31 }
  0x4b   : > { %974 = vmatpush3.bf16.msra.mxu0 %v1139_v32 }
  0x4c   : > { %996 = vmatpush3.bf16.msra.mxu1 %v1140_v34 }
  0x4e   : > { %662 = vmatmul.mubr.bf16.vlgmr.msra.gmra.mxu0 %v423_v45 }
  0x4f   : > { %702 = vmatmul.mubr.bf16.vlgmr.msra.gmra.mxu1 %v431_v47 }
 0x10e   : > { %v975_v48 = vpop.f32.mrf.mxu0 }
 0x10f   : > { %v997_v49 = vpop.f32.mrf.mxu1 }
 0x110   : > { %v976_v50 = vpop.f32.mrf.mxu0 }
 0x111   : > { %v977_v51 = vadd.f32 %v976_v50, %v975_v48  ;;  %v998_v52 = vpop.f32.mrf.mxu1 }
 0x112   : > { %v978_v53 = vpop.f32.mrf.mxu0  ;;  %v999_v54 = vadd.f32 %v998_v52, %v997_v49 }
 0x113   : > { %v1000_v56 = vpop.f32.mrf.mxu1 }
 0x114   : > { %v979_v57 = vpop.f32.mrf.mxu0  ;;  %v704_v58 = vadd.f32 %v999_v54, %v977_v51  ;;  %715 = sbr.rel (%p951_p12) target bundleno = 466 (0x1d2), region = 82 }
 0x115   : > { %v1001_v59 = vpop.f32.mrf.mxu1 }
 0x116   : > { %v709_v60 = vadd.f32 %v704_v58, %v330_v55 }
 0x118   : > { %711 = vst.msk [vmem:[#allocation2] sm:$0xff] %vm710_vm1, %v709_v60 }
 0x119   : > { %v717_v61 = vld [vmem:[%s1386_s2] sm:$0x1]  ;;  %v721_v62 = vsub.s32 0, %v405_v37  ;;  %v736_v6 = vstv %s735_s30  ;;  %vm744_vm2 = vcmask 7168  }
 0x11a   : > { %v718_v63 = vunpack.c.l.bf16 %v717_v61  ;;  %v952_v2 = vld [vmem:[%s1387_s3] ss:$0 sm:$0xff] }
 0x11c   : > { %v722_v1 = vrot.slane %v718_v63, %v721_v62 }
 0x11f   : > { %v716_v0 = vld [vmem:[#allocation2] sm:$0xff] }
 0x120   : > { %v723_v3 = vadd.f32 %v722_v1, %v716_v0 }
 0x122   : > { %v731_v4 = vmul.f32 %v952_v2, %v723_v3 }
 0x124   : > { %v732_v5 = vsel %vm710_vm1, %v731_v4, 0.0 }
 0x125   : > { %733 = vadd.xlane.f32.xlu0 %v732_v5 }
 0x1ae   : > { %v734_v7 = vpop.xlane.xlu0 %733 }
 0x1af   : > { %v737_v8 = vadd.f32 %v736_v6, %v734_v7 }
 0x1b1   : > { %v953_v9 = vmul.f32 -1.442695, %v737_v8 }
 0x1b3   : > { %1143 = vpow2.f32 %v953_v9 }
 0x1c0   : > { %v1144_v10 = vpop.eup %1143 }
 0x1c1   : > { %v741_v11 = vadd.f32 1.0, %v1144_v10 }
 0x1c3   : > { %1145 = vrcp.f32 %v741_v11 }
 0x1d0   : > { %v1146_v12 = vpop.eup %1145 }
 0x1d1   : > { %745 = vst.msk [vmem:[#allocation5] sm:$0xff] %vm744_vm2, %v1146_v12 }
 0x1d2 PF: > { %p954_p13 = scmp.ne.s32.totalorder %s907_s4, 1 }
 0x1d3   : > { %s1225_s22 = smov (!%p954_p13), 0  }
 0x1d4   : > { %748 = sbr.rel (%p954_p13) target bundleno = 481 (0x1e1), region = 86 }
 0x1d9 LB: >> { %v773_v13 = vld [vmem:[#allocation5] sm:$0x3]  ;;  %s767_s22 = sadd.s32 1, %s1227_s22   ;;  %s1227_s22 = sphi %s1225_s22, %s767_s22  }
 0x1da   : >> { %774 = vst [vmem:[%s1389_s5] sm:$0x3] %v773_v13  ;;  %p766_p0 = scmp.ge.s32.totalorder %s767_s22, 1 }
 0x1dc   : > { %769 = sbr.rel (!%p766_p0) target bundleno = 473 (0x1d9), region = 162 }
 0x1e1 PF: > { %s16_s24 = sadd.s32 1, %s1219_s24   ;;  %s1390_s20 = smov %s1207_s21 }
 0x1e2   : > { %p13_p1 = scmp.ge.s32.totalorder %s16_s24, 4   ;;  %s1391_s21 = smov %s1300_s28 }
 0x1e3   : > { %s1392_s22 = smov %s1215_s23  ;;  %s1393_s23 = smov %s1395_s25 }
 0x1e4   :  { %15 = sbr.rel (!%p13_p1) target bundleno = 5 (0x5), region = 173 }

</bundles_post_ra>
